<compile_context>
chip_gen: v5e
topology: v5e:2x2
jax: 0.10.0
libtpu: 0.0.40
codegen_flags: <defaults>
</compile_context>

<pallas_src>
import numpy as np
import jax
import jax.numpy as jnp
from jax.experimental import pallas as pl
from jax.experimental.pallas import tpu as pltpu

CIN, COUT, K, DIL, STRIDE = 8, 1, 3, 2, 1
HIN = WIN = 7
HOUT = (HIN - 1) * STRIDE + DIL * (K - 1) + 1      # 11
WOUT = (WIN - 1) * STRIDE + DIL * (K - 1) + 1      # 11
MIN_VALUE, MAX_VALUE = -2.0, 0.0


def convt_clamp_kernel(x_ref, w_ref, b_ref, o_ref):
    # x_ref : (1, CIN, HIN, WIN)    f32 VMEM  -- raw NCHW input (never padded)
    # w_ref : (CIN*K*K,)            f32 SMEM  -- native PyTorch (CIN,1,K,K) layout, flattened
    # b_ref : (COUT,)               f32 SMEM  -- bias
    # o_ref : (1, COUT, HOUT, WOUT) f32 VMEM

    # The eight (7,7) channel frames -- one vreg each, loaded once.
    xs = [x_ref[0, ci] for ci in range(CIN)]

    def chan_reduce(kh, kw):
        # S_{kh,kw}[i,j] = sum_ci x[ci,i,j] * W[ci,0,kh,kw]   (pairwise tree, depth 3)
        terms = [xs[ci] * w_ref[ci * (K * K) + kh * K + kw] for ci in range(CIN)]
        while len(terms) > 1:
            terms = [terms[i] + terms[i + 1] for i in range(0, len(terms), 2)]
        return terms[0]                                   # (HIN, WIN)

    def place_cols(s, c0):
        # zero-extend (HIN, WIN) -> (HIN, WOUT) with s starting at column c0
        parts = []
        if c0 > 0:
            parts.append(jnp.zeros((HIN, c0), jnp.float32))
        parts.append(s)
        rem = WOUT - WIN - c0
        if rem > 0:
            parts.append(jnp.zeros((HIN, rem), jnp.float32))
        return jnp.concatenate(parts, axis=1)

    def place_rows(s, r0):
        # zero-extend (HIN, WOUT) -> (HOUT, WOUT) with s starting at row r0
        parts = []
        if r0 > 0:
            parts.append(jnp.zeros((r0, WOUT), jnp.float32))
        parts.append(s)
        rem = HOUT - HIN - r0
        if rem > 0:
            parts.append(jnp.zeros((rem, WOUT), jnp.float32))
        return jnp.concatenate(parts, axis=0)

    # Scatter form of ConvTranspose2d (stride=1, dilation=DIL):
    #   out[i + DIL*kh, j + DIL*kw] += x[ci, i, j] * W[ci, 0, kh, kw]
    # Three independent per-kh accumulator chains, tree-summed at the end.
    row_frames = []
    for kh in range(K):
        taps = [place_cols(chan_reduce(kh, kw), DIL * kw) for kw in range(K)]
        row = (taps[0] + taps[1]) + taps[2]               # (HIN, WOUT)
        row_frames.append(place_rows(row, DIL * kh))      # (HOUT, WOUT)

    acc = (row_frames[0] + row_frames[1]) + row_frames[2] + b_ref[0]
    acc = jnp.maximum(acc, MIN_VALUE)    # torch.clamp_min(v1, -2)
    acc = jnp.minimum(acc, MAX_VALUE)    # torch.clamp_max(v2,  0)
    o_ref[0, 0] = acc


@jax.jit
def conv_transpose_clamp(x_nchw, weight, bias):
    """x_nchw: (1, CIN, HIN, WIN); weight: (CIN, COUT, K, K); bias: (COUT,)."""
    w_flat = weight.reshape(-1)   # contiguous reshape (free); keeps SMEM footprint 1-D
    return pl.pallas_call(
        convt_clamp_kernel,
        out_shape=jax.ShapeDtypeStruct((1, COUT, HOUT, WOUT), jnp.float32),
        in_specs=[
            pl.BlockSpec(memory_space=pltpu.MemorySpace.VMEM),   # x, whole array
            pl.BlockSpec(memory_space=pltpu.MemorySpace.SMEM),   # flattened weights
            pl.BlockSpec(memory_space=pltpu.MemorySpace.SMEM),   # bias
        ],
        out_specs=pl.BlockSpec(memory_space=pltpu.MemorySpace.VMEM),
    )(x_nchw, w_flat, bias)


def reference(x_nchw, weight, bias):
    """Direct scatter-style ConvTranspose2d + clamp reference (numpy)."""
    xn = np.asarray(x_nchw[0], np.float32)
    Wn = np.asarray(weight, np.float32)
    bn = np.asarray(bias, np.float32)
    out = np.zeros((HOUT, WOUT), np.float32)
    for ci in range(CIN):
        for i in range(HIN):
            for j in range(WIN):
                for kh in range(K):
                    for kw in range(K):
                        out[i + DIL * kh, j + DIL * kw] += xn[ci, i, j] * Wn[ci, 0, kh, kw]
    out += bn[0]
    out = np.maximum(out, MIN_VALUE)
    out = np.minimum(out, MAX_VALUE)
    return out.reshape(1, 1, HOUT, WOUT)


if __name__ == "__main__":
    key = jax.random.PRNGKey(0)
    kx, kw_, kb = jax.random.split(key, 3)

    x1 = jax.random.normal(kx, (1, CIN, HIN, WIN), dtype=jnp.float32)
    # deterministic PyTorch-style uniform init: bound = 1/sqrt(fan_in)
    bound = 1.0 / np.sqrt(CIN * K * K)
    weight = jax.random.uniform(kw_, (CIN, COUT, K, K), jnp.float32, -bound, bound)
    bias = jax.random.uniform(kb, (COUT,), jnp.float32, -bound, bound)

    out = conv_transpose_clamp(x1, weight, bias)
    out = jax.block_until_ready(out)

    ref = reference(x1, weight, bias)
    np.testing.assert_allclose(np.asarray(out), ref, rtol=1e-4, atol=1e-4)
    assert out.shape == (1, COUT, HOUT, WOUT)

    print("KERNEL_OK")
</pallas_src>

<mosaic_0001>
module attributes {stable_mosaic.version = 11 : i64} {
  func.func @convt_clamp_kernel(%arg0: memref<1x8x7x7xf32, #tpu.memory_space<vmem>>, %arg1: memref<72xf32, #tpu.memory_space<smem>>, %arg2: memref<1xf32, #tpu.memory_space<smem>>, %arg3: memref<1x1x11x11xf32, #tpu.memory_space<vmem>>) attributes {dimension_semantics = [], scalar_prefetch = 0 : i64, scratch_operands = 0 : i64, tpu.core_type = #tpu.core_type<tc>} {
    %c0 = arith.constant 0 : index
    %c0_0 = arith.constant 0 : index
    %c0_1 = arith.constant 0 : index
    %c0_2 = arith.constant 0 : index
    %0 = vector.load %arg0[%c0, %c0_0, %c0_1, %c0_2] : memref<1x8x7x7xf32, #tpu.memory_space<vmem>>, vector<1x1x7x7xf32>
    %1 = vector.shape_cast %0 : vector<1x1x7x7xf32> to vector<7x7xf32>
    %c0_3 = arith.constant 0 : index
    %c1 = arith.constant 1 : index
    %c0_4 = arith.constant 0 : index
    %c0_5 = arith.constant 0 : index
    %2 = vector.load %arg0[%c0_3, %c1, %c0_4, %c0_5] : memref<1x8x7x7xf32, #tpu.memory_space<vmem>>, vector<1x1x7x7xf32>
    %3 = vector.shape_cast %2 : vector<1x1x7x7xf32> to vector<7x7xf32>
    %c0_6 = arith.constant 0 : index
    %c2 = arith.constant 2 : index
    %c0_7 = arith.constant 0 : index
    %c0_8 = arith.constant 0 : index
    %4 = vector.load %arg0[%c0_6, %c2, %c0_7, %c0_8] : memref<1x8x7x7xf32, #tpu.memory_space<vmem>>, vector<1x1x7x7xf32>
    %5 = vector.shape_cast %4 : vector<1x1x7x7xf32> to vector<7x7xf32>
    %c0_9 = arith.constant 0 : index
    %c3 = arith.constant 3 : index
    %c0_10 = arith.constant 0 : index
    %c0_11 = arith.constant 0 : index
    %6 = vector.load %arg0[%c0_9, %c3, %c0_10, %c0_11] : memref<1x8x7x7xf32, #tpu.memory_space<vmem>>, vector<1x1x7x7xf32>
    %7 = vector.shape_cast %6 : vector<1x1x7x7xf32> to vector<7x7xf32>
    %c0_12 = arith.constant 0 : index
    %c4 = arith.constant 4 : index
    %c0_13 = arith.constant 0 : index
    %c0_14 = arith.constant 0 : index
    %8 = vector.load %arg0[%c0_12, %c4, %c0_13, %c0_14] : memref<1x8x7x7xf32, #tpu.memory_space<vmem>>, vector<1x1x7x7xf32>
    %9 = vector.shape_cast %8 : vector<1x1x7x7xf32> to vector<7x7xf32>
    %c0_15 = arith.constant 0 : index
    %c5 = arith.constant 5 : index
    %c0_16 = arith.constant 0 : index
    %c0_17 = arith.constant 0 : index
    %10 = vector.load %arg0[%c0_15, %c5, %c0_16, %c0_17] : memref<1x8x7x7xf32, #tpu.memory_space<vmem>>, vector<1x1x7x7xf32>
    %11 = vector.shape_cast %10 : vector<1x1x7x7xf32> to vector<7x7xf32>
    %c0_18 = arith.constant 0 : index
    %c6 = arith.constant 6 : index
    %c0_19 = arith.constant 0 : index
    %c0_20 = arith.constant 0 : index
    %12 = vector.load %arg0[%c0_18, %c6, %c0_19, %c0_20] : memref<1x8x7x7xf32, #tpu.memory_space<vmem>>, vector<1x1x7x7xf32>
    %13 = vector.shape_cast %12 : vector<1x1x7x7xf32> to vector<7x7xf32>
    %c0_21 = arith.constant 0 : index
    %c7 = arith.constant 7 : index
    %c0_22 = arith.constant 0 : index
    %c0_23 = arith.constant 0 : index
    %14 = vector.load %arg0[%c0_21, %c7, %c0_22, %c0_23] : memref<1x8x7x7xf32, #tpu.memory_space<vmem>>, vector<1x1x7x7xf32>
    %15 = vector.shape_cast %14 : vector<1x1x7x7xf32> to vector<7x7xf32>
    %c0_24 = arith.constant 0 : index
    %16 = memref.load %arg1[%c0_24] : memref<72xf32, #tpu.memory_space<smem>>
    %17 = vector.broadcast %16 : f32 to vector<7x7xf32>
    %18 = arith.mulf %1, %17 : vector<7x7xf32>
    %c9 = arith.constant 9 : index
    %19 = memref.load %arg1[%c9] : memref<72xf32, #tpu.memory_space<smem>>
    %20 = vector.broadcast %19 : f32 to vector<7x7xf32>
    %21 = arith.mulf %3, %20 : vector<7x7xf32>
    %c18 = arith.constant 18 : index
    %22 = memref.load %arg1[%c18] : memref<72xf32, #tpu.memory_space<smem>>
    %23 = vector.broadcast %22 : f32 to vector<7x7xf32>
    %24 = arith.mulf %5, %23 : vector<7x7xf32>
    %c27 = arith.constant 27 : index
    %25 = memref.load %arg1[%c27] : memref<72xf32, #tpu.memory_space<smem>>
    %26 = vector.broadcast %25 : f32 to vector<7x7xf32>
    %27 = arith.mulf %7, %26 : vector<7x7xf32>
    %c36 = arith.constant 36 : index
    %28 = memref.load %arg1[%c36] : memref<72xf32, #tpu.memory_space<smem>>
    %29 = vector.broadcast %28 : f32 to vector<7x7xf32>
    %30 = arith.mulf %9, %29 : vector<7x7xf32>
    %c45 = arith.constant 45 : index
    %31 = memref.load %arg1[%c45] : memref<72xf32, #tpu.memory_space<smem>>
    %32 = vector.broadcast %31 : f32 to vector<7x7xf32>
    %33 = arith.mulf %11, %32 : vector<7x7xf32>
    %c54 = arith.constant 54 : index
    %34 = memref.load %arg1[%c54] : memref<72xf32, #tpu.memory_space<smem>>
    %35 = vector.broadcast %34 : f32 to vector<7x7xf32>
    %36 = arith.mulf %13, %35 : vector<7x7xf32>
    %c63 = arith.constant 63 : index
    %37 = memref.load %arg1[%c63] : memref<72xf32, #tpu.memory_space<smem>>
    %38 = vector.broadcast %37 : f32 to vector<7x7xf32>
    %39 = arith.mulf %15, %38 : vector<7x7xf32>
    %40 = arith.addf %18, %21 : vector<7x7xf32>
    %41 = arith.addf %24, %27 : vector<7x7xf32>
    %42 = arith.addf %30, %33 : vector<7x7xf32>
    %43 = arith.addf %36, %39 : vector<7x7xf32>
    %44 = arith.addf %40, %41 : vector<7x7xf32>
    %45 = arith.addf %42, %43 : vector<7x7xf32>
    %46 = arith.addf %44, %45 : vector<7x7xf32>
    %cst = arith.constant 0.000000e+00 : f32
    %47 = vector.broadcast %cst : f32 to vector<7x4xf32>
    %48 = tpu.concatenate %46, %47 in 1 : vector<7x7xf32>, vector<7x4xf32> -> vector<7x11xf32>
    %c1_25 = arith.constant 1 : index
    %49 = memref.load %arg1[%c1_25] : memref<72xf32, #tpu.memory_space<smem>>
    %50 = vector.broadcast %49 : f32 to vector<7x7xf32>
    %51 = arith.mulf %1, %50 : vector<7x7xf32>
    %c10 = arith.constant 10 : index
    %52 = memref.load %arg1[%c10] : memref<72xf32, #tpu.memory_space<smem>>
    %53 = vector.broadcast %52 : f32 to vector<7x7xf32>
    %54 = arith.mulf %3, %53 : vector<7x7xf32>
    %c19 = arith.constant 19 : index
    %55 = memref.load %arg1[%c19] : memref<72xf32, #tpu.memory_space<smem>>
    %56 = vector.broadcast %55 : f32 to vector<7x7xf32>
    %57 = arith.mulf %5, %56 : vector<7x7xf32>
    %c28 = arith.constant 28 : index
    %58 = memref.load %arg1[%c28] : memref<72xf32, #tpu.memory_space<smem>>
    %59 = vector.broadcast %58 : f32 to vector<7x7xf32>
    %60 = arith.mulf %7, %59 : vector<7x7xf32>
    %c37 = arith.constant 37 : index
    %61 = memref.load %arg1[%c37] : memref<72xf32, #tpu.memory_space<smem>>
    %62 = vector.broadcast %61 : f32 to vector<7x7xf32>
    %63 = arith.mulf %9, %62 : vector<7x7xf32>
    %c46 = arith.constant 46 : index
    %64 = memref.load %arg1[%c46] : memref<72xf32, #tpu.memory_space<smem>>
    %65 = vector.broadcast %64 : f32 to vector<7x7xf32>
    %66 = arith.mulf %11, %65 : vector<7x7xf32>
    %c55 = arith.constant 55 : index
    %67 = memref.load %arg1[%c55] : memref<72xf32, #tpu.memory_space<smem>>
    %68 = vector.broadcast %67 : f32 to vector<7x7xf32>
    %69 = arith.mulf %13, %68 : vector<7x7xf32>
    %c64 = arith.constant 64 : index
    %70 = memref.load %arg1[%c64] : memref<72xf32, #tpu.memory_space<smem>>
    %71 = vector.broadcast %70 : f32 to vector<7x7xf32>
    %72 = arith.mulf %15, %71 : vector<7x7xf32>
    %73 = arith.addf %51, %54 : vector<7x7xf32>
    %74 = arith.addf %57, %60 : vector<7x7xf32>
    %75 = arith.addf %63, %66 : vector<7x7xf32>
    %76 = arith.addf %69, %72 : vector<7x7xf32>
    %77 = arith.addf %73, %74 : vector<7x7xf32>
    %78 = arith.addf %75, %76 : vector<7x7xf32>
    %79 = arith.addf %77, %78 : vector<7x7xf32>
    %cst_26 = arith.constant 0.000000e+00 : f32
    %80 = vector.broadcast %cst_26 : f32 to vector<7x2xf32>
    %cst_27 = arith.constant 0.000000e+00 : f32
    %81 = vector.broadcast %cst_27 : f32 to vector<7x2xf32>
    %82 = tpu.concatenate %80, %79, %81 in 1 : vector<7x2xf32>, vector<7x7xf32>, vector<7x2xf32> -> vector<7x11xf32>
    %c2_28 = arith.constant 2 : index
    %83 = memref.load %arg1[%c2_28] : memref<72xf32, #tpu.memory_space<smem>>
    %84 = vector.broadcast %83 : f32 to vector<7x7xf32>
    %85 = arith.mulf %1, %84 : vector<7x7xf32>
    %c11 = arith.constant 11 : index
    %86 = memref.load %arg1[%c11] : memref<72xf32, #tpu.memory_space<smem>>
    %87 = vector.broadcast %86 : f32 to vector<7x7xf32>
    %88 = arith.mulf %3, %87 : vector<7x7xf32>
    %c20 = arith.constant 20 : index
    %89 = memref.load %arg1[%c20] : memref<72xf32, #tpu.memory_space<smem>>
    %90 = vector.broadcast %89 : f32 to vector<7x7xf32>
    %91 = arith.mulf %5, %90 : vector<7x7xf32>
    %c29 = arith.constant 29 : index
    %92 = memref.load %arg1[%c29] : memref<72xf32, #tpu.memory_space<smem>>
    %93 = vector.broadcast %92 : f32 to vector<7x7xf32>
    %94 = arith.mulf %7, %93 : vector<7x7xf32>
    %c38 = arith.constant 38 : index
    %95 = memref.load %arg1[%c38] : memref<72xf32, #tpu.memory_space<smem>>
    %96 = vector.broadcast %95 : f32 to vector<7x7xf32>
    %97 = arith.mulf %9, %96 : vector<7x7xf32>
    %c47 = arith.constant 47 : index
    %98 = memref.load %arg1[%c47] : memref<72xf32, #tpu.memory_space<smem>>
    %99 = vector.broadcast %98 : f32 to vector<7x7xf32>
    %100 = arith.mulf %11, %99 : vector<7x7xf32>
    %c56 = arith.constant 56 : index
    %101 = memref.load %arg1[%c56] : memref<72xf32, #tpu.memory_space<smem>>
    %102 = vector.broadcast %101 : f32 to vector<7x7xf32>
    %103 = arith.mulf %13, %102 : vector<7x7xf32>
    %c65 = arith.constant 65 : index
    %104 = memref.load %arg1[%c65] : memref<72xf32, #tpu.memory_space<smem>>
    %105 = vector.broadcast %104 : f32 to vector<7x7xf32>
    %106 = arith.mulf %15, %105 : vector<7x7xf32>
    %107 = arith.addf %85, %88 : vector<7x7xf32>
    %108 = arith.addf %91, %94 : vector<7x7xf32>
    %109 = arith.addf %97, %100 : vector<7x7xf32>
    %110 = arith.addf %103, %106 : vector<7x7xf32>
    %111 = arith.addf %107, %108 : vector<7x7xf32>
    %112 = arith.addf %109, %110 : vector<7x7xf32>
    %113 = arith.addf %111, %112 : vector<7x7xf32>
    %cst_29 = arith.constant 0.000000e+00 : f32
    %114 = vector.broadcast %cst_29 : f32 to vector<7x4xf32>
    %115 = tpu.concatenate %114, %113 in 1 : vector<7x4xf32>, vector<7x7xf32> -> vector<7x11xf32>
    %116 = arith.addf %48, %82 : vector<7x11xf32>
    %117 = arith.addf %116, %115 : vector<7x11xf32>
    %cst_30 = arith.constant 0.000000e+00 : f32
    %118 = vector.broadcast %cst_30 : f32 to vector<4x11xf32>
    %119 = tpu.concatenate %117, %118 in 0 : vector<7x11xf32>, vector<4x11xf32> -> vector<11x11xf32>
    %c3_31 = arith.constant 3 : index
    %120 = memref.load %arg1[%c3_31] : memref<72xf32, #tpu.memory_space<smem>>
    %121 = vector.broadcast %120 : f32 to vector<7x7xf32>
    %122 = arith.mulf %1, %121 : vector<7x7xf32>
    %c12 = arith.constant 12 : index
    %123 = memref.load %arg1[%c12] : memref<72xf32, #tpu.memory_space<smem>>
    %124 = vector.broadcast %123 : f32 to vector<7x7xf32>
    %125 = arith.mulf %3, %124 : vector<7x7xf32>
    %c21 = arith.constant 21 : index
    %126 = memref.load %arg1[%c21] : memref<72xf32, #tpu.memory_space<smem>>
    %127 = vector.broadcast %126 : f32 to vector<7x7xf32>
    %128 = arith.mulf %5, %127 : vector<7x7xf32>
    %c30 = arith.constant 30 : index
    %129 = memref.load %arg1[%c30] : memref<72xf32, #tpu.memory_space<smem>>
    %130 = vector.broadcast %129 : f32 to vector<7x7xf32>
    %131 = arith.mulf %7, %130 : vector<7x7xf32>
    %c39 = arith.constant 39 : index
    %132 = memref.load %arg1[%c39] : memref<72xf32, #tpu.memory_space<smem>>
    %133 = vector.broadcast %132 : f32 to vector<7x7xf32>
    %134 = arith.mulf %9, %133 : vector<7x7xf32>
    %c48 = arith.constant 48 : index
    %135 = memref.load %arg1[%c48] : memref<72xf32, #tpu.memory_space<smem>>
    %136 = vector.broadcast %135 : f32 to vector<7x7xf32>
    %137 = arith.mulf %11, %136 : vector<7x7xf32>
    %c57 = arith.constant 57 : index
    %138 = memref.load %arg1[%c57] : memref<72xf32, #tpu.memory_space<smem>>
    %139 = vector.broadcast %138 : f32 to vector<7x7xf32>
    %140 = arith.mulf %13, %139 : vector<7x7xf32>
    %c66 = arith.constant 66 : index
    %141 = memref.load %arg1[%c66] : memref<72xf32, #tpu.memory_space<smem>>
    %142 = vector.broadcast %141 : f32 to vector<7x7xf32>
    %143 = arith.mulf %15, %142 : vector<7x7xf32>
    %144 = arith.addf %122, %125 : vector<7x7xf32>
    %145 = arith.addf %128, %131 : vector<7x7xf32>
    %146 = arith.addf %134, %137 : vector<7x7xf32>
    %147 = arith.addf %140, %143 : vector<7x7xf32>
    %148 = arith.addf %144, %145 : vector<7x7xf32>
    %149 = arith.addf %146, %147 : vector<7x7xf32>
    %150 = arith.addf %148, %149 : vector<7x7xf32>
    %cst_32 = arith.constant 0.000000e+00 : f32
    %151 = vector.broadcast %cst_32 : f32 to vector<7x4xf32>
    %152 = tpu.concatenate %150, %151 in 1 : vector<7x7xf32>, vector<7x4xf32> -> vector<7x11xf32>
    %c4_33 = arith.constant 4 : index
    %153 = memref.load %arg1[%c4_33] : memref<72xf32, #tpu.memory_space<smem>>
    %154 = vector.broadcast %153 : f32 to vector<7x7xf32>
    %155 = arith.mulf %1, %154 : vector<7x7xf32>
    %c13 = arith.constant 13 : index
    %156 = memref.load %arg1[%c13] : memref<72xf32, #tpu.memory_space<smem>>
    %157 = vector.broadcast %156 : f32 to vector<7x7xf32>
    %158 = arith.mulf %3, %157 : vector<7x7xf32>
    %c22 = arith.constant 22 : index
    %159 = memref.load %arg1[%c22] : memref<72xf32, #tpu.memory_space<smem>>
    %160 = vector.broadcast %159 : f32 to vector<7x7xf32>
    %161 = arith.mulf %5, %160 : vector<7x7xf32>
    %c31 = arith.constant 31 : index
    %162 = memref.load %arg1[%c31] : memref<72xf32, #tpu.memory_space<smem>>
    %163 = vector.broadcast %162 : f32 to vector<7x7xf32>
    %164 = arith.mulf %7, %163 : vector<7x7xf32>
    %c40 = arith.constant 40 : index
    %165 = memref.load %arg1[%c40] : memref<72xf32, #tpu.memory_space<smem>>
    %166 = vector.broadcast %165 : f32 to vector<7x7xf32>
    %167 = arith.mulf %9, %166 : vector<7x7xf32>
    %c49 = arith.constant 49 : index
    %168 = memref.load %arg1[%c49] : memref<72xf32, #tpu.memory_space<smem>>
    %169 = vector.broadcast %168 : f32 to vector<7x7xf32>
    %170 = arith.mulf %11, %169 : vector<7x7xf32>
    %c58 = arith.constant 58 : index
    %171 = memref.load %arg1[%c58] : memref<72xf32, #tpu.memory_space<smem>>
    %172 = vector.broadcast %171 : f32 to vector<7x7xf32>
    %173 = arith.mulf %13, %172 : vector<7x7xf32>
    %c67 = arith.constant 67 : index
    %174 = memref.load %arg1[%c67] : memref<72xf32, #tpu.memory_space<smem>>
    %175 = vector.broadcast %174 : f32 to vector<7x7xf32>
    %176 = arith.mulf %15, %175 : vector<7x7xf32>
    %177 = arith.addf %155, %158 : vector<7x7xf32>
    %178 = arith.addf %161, %164 : vector<7x7xf32>
    %179 = arith.addf %167, %170 : vector<7x7xf32>
    %180 = arith.addf %173, %176 : vector<7x7xf32>
    %181 = arith.addf %177, %178 : vector<7x7xf32>
    %182 = arith.addf %179, %180 : vector<7x7xf32>
    %183 = arith.addf %181, %182 : vector<7x7xf32>
    %cst_34 = arith.constant 0.000000e+00 : f32
    %184 = vector.broadcast %cst_34 : f32 to vector<7x2xf32>
    %cst_35 = arith.constant 0.000000e+00 : f32
    %185 = vector.broadcast %cst_35 : f32 to vector<7x2xf32>
    %186 = tpu.concatenate %184, %183, %185 in 1 : vector<7x2xf32>, vector<7x7xf32>, vector<7x2xf32> -> vector<7x11xf32>
    %c5_36 = arith.constant 5 : index
    %187 = memref.load %arg1[%c5_36] : memref<72xf32, #tpu.memory_space<smem>>
    %188 = vector.broadcast %187 : f32 to vector<7x7xf32>
    %189 = arith.mulf %1, %188 : vector<7x7xf32>
    %c14 = arith.constant 14 : index
    %190 = memref.load %arg1[%c14] : memref<72xf32, #tpu.memory_space<smem>>
    %191 = vector.broadcast %190 : f32 to vector<7x7xf32>
    %192 = arith.mulf %3, %191 : vector<7x7xf32>
    %c23 = arith.constant 23 : index
    %193 = memref.load %arg1[%c23] : memref<72xf32, #tpu.memory_space<smem>>
    %194 = vector.broadcast %193 : f32 to vector<7x7xf32>
    %195 = arith.mulf %5, %194 : vector<7x7xf32>
    %c32 = arith.constant 32 : index
    %196 = memref.load %arg1[%c32] : memref<72xf32, #tpu.memory_space<smem>>
    %197 = vector.broadcast %196 : f32 to vector<7x7xf32>
    %198 = arith.mulf %7, %197 : vector<7x7xf32>
    %c41 = arith.constant 41 : index
    %199 = memref.load %arg1[%c41] : memref<72xf32, #tpu.memory_space<smem>>
    %200 = vector.broadcast %199 : f32 to vector<7x7xf32>
    %201 = arith.mulf %9, %200 : vector<7x7xf32>
    %c50 = arith.constant 50 : index
    %202 = memref.load %arg1[%c50] : memref<72xf32, #tpu.memory_space<smem>>
    %203 = vector.broadcast %202 : f32 to vector<7x7xf32>
    %204 = arith.mulf %11, %203 : vector<7x7xf32>
    %c59 = arith.constant 59 : index
    %205 = memref.load %arg1[%c59] : memref<72xf32, #tpu.memory_space<smem>>
    %206 = vector.broadcast %205 : f32 to vector<7x7xf32>
    %207 = arith.mulf %13, %206 : vector<7x7xf32>
    %c68 = arith.constant 68 : index
    %208 = memref.load %arg1[%c68] : memref<72xf32, #tpu.memory_space<smem>>
    %209 = vector.broadcast %208 : f32 to vector<7x7xf32>
    %210 = arith.mulf %15, %209 : vector<7x7xf32>
    %211 = arith.addf %189, %192 : vector<7x7xf32>
    %212 = arith.addf %195, %198 : vector<7x7xf32>
    %213 = arith.addf %201, %204 : vector<7x7xf32>
    %214 = arith.addf %207, %210 : vector<7x7xf32>
    %215 = arith.addf %211, %212 : vector<7x7xf32>
    %216 = arith.addf %213, %214 : vector<7x7xf32>
    %217 = arith.addf %215, %216 : vector<7x7xf32>
    %cst_37 = arith.constant 0.000000e+00 : f32
    %218 = vector.broadcast %cst_37 : f32 to vector<7x4xf32>
    %219 = tpu.concatenate %218, %217 in 1 : vector<7x4xf32>, vector<7x7xf32> -> vector<7x11xf32>
    %220 = arith.addf %152, %186 : vector<7x11xf32>
    %221 = arith.addf %220, %219 : vector<7x11xf32>
    %cst_38 = arith.constant 0.000000e+00 : f32
    %222 = vector.broadcast %cst_38 : f32 to vector<2x11xf32>
    %cst_39 = arith.constant 0.000000e+00 : f32
    %223 = vector.broadcast %cst_39 : f32 to vector<2x11xf32>
    %224 = tpu.concatenate %222, %221, %223 in 0 : vector<2x11xf32>, vector<7x11xf32>, vector<2x11xf32> -> vector<11x11xf32>
    %c6_40 = arith.constant 6 : index
    %225 = memref.load %arg1[%c6_40] : memref<72xf32, #tpu.memory_space<smem>>
    %226 = vector.broadcast %225 : f32 to vector<7x7xf32>
    %227 = arith.mulf %1, %226 : vector<7x7xf32>
    %c15 = arith.constant 15 : index
    %228 = memref.load %arg1[%c15] : memref<72xf32, #tpu.memory_space<smem>>
    %229 = vector.broadcast %228 : f32 to vector<7x7xf32>
    %230 = arith.mulf %3, %229 : vector<7x7xf32>
    %c24 = arith.constant 24 : index
    %231 = memref.load %arg1[%c24] : memref<72xf32, #tpu.memory_space<smem>>
    %232 = vector.broadcast %231 : f32 to vector<7x7xf32>
    %233 = arith.mulf %5, %232 : vector<7x7xf32>
    %c33 = arith.constant 33 : index
    %234 = memref.load %arg1[%c33] : memref<72xf32, #tpu.memory_space<smem>>
    %235 = vector.broadcast %234 : f32 to vector<7x7xf32>
    %236 = arith.mulf %7, %235 : vector<7x7xf32>
    %c42 = arith.constant 42 : index
    %237 = memref.load %arg1[%c42] : memref<72xf32, #tpu.memory_space<smem>>
    %238 = vector.broadcast %237 : f32 to vector<7x7xf32>
    %239 = arith.mulf %9, %238 : vector<7x7xf32>
    %c51 = arith.constant 51 : index
    %240 = memref.load %arg1[%c51] : memref<72xf32, #tpu.memory_space<smem>>
    %241 = vector.broadcast %240 : f32 to vector<7x7xf32>
    %242 = arith.mulf %11, %241 : vector<7x7xf32>
    %c60 = arith.constant 60 : index
    %243 = memref.load %arg1[%c60] : memref<72xf32, #tpu.memory_space<smem>>
    %244 = vector.broadcast %243 : f32 to vector<7x7xf32>
    %245 = arith.mulf %13, %244 : vector<7x7xf32>
    %c69 = arith.constant 69 : index
    %246 = memref.load %arg1[%c69] : memref<72xf32, #tpu.memory_space<smem>>
    %247 = vector.broadcast %246 : f32 to vector<7x7xf32>
    %248 = arith.mulf %15, %247 : vector<7x7xf32>
    %249 = arith.addf %227, %230 : vector<7x7xf32>
    %250 = arith.addf %233, %236 : vector<7x7xf32>
    %251 = arith.addf %239, %242 : vector<7x7xf32>
    %252 = arith.addf %245, %248 : vector<7x7xf32>
    %253 = arith.addf %249, %250 : vector<7x7xf32>
    %254 = arith.addf %251, %252 : vector<7x7xf32>
    %255 = arith.addf %253, %254 : vector<7x7xf32>
    %cst_41 = arith.constant 0.000000e+00 : f32
    %256 = vector.broadcast %cst_41 : f32 to vector<7x4xf32>
    %257 = tpu.concatenate %255, %256 in 1 : vector<7x7xf32>, vector<7x4xf32> -> vector<7x11xf32>
    %c7_42 = arith.constant 7 : index
    %258 = memref.load %arg1[%c7_42] : memref<72xf32, #tpu.memory_space<smem>>
    %259 = vector.broadcast %258 : f32 to vector<7x7xf32>
    %260 = arith.mulf %1, %259 : vector<7x7xf32>
    %c16 = arith.constant 16 : index
    %261 = memref.load %arg1[%c16] : memref<72xf32, #tpu.memory_space<smem>>
    %262 = vector.broadcast %261 : f32 to vector<7x7xf32>
    %263 = arith.mulf %3, %262 : vector<7x7xf32>
    %c25 = arith.constant 25 : index
    %264 = memref.load %arg1[%c25] : memref<72xf32, #tpu.memory_space<smem>>
    %265 = vector.broadcast %264 : f32 to vector<7x7xf32>
    %266 = arith.mulf %5, %265 : vector<7x7xf32>
    %c34 = arith.constant 34 : index
    %267 = memref.load %arg1[%c34] : memref<72xf32, #tpu.memory_space<smem>>
    %268 = vector.broadcast %267 : f32 to vector<7x7xf32>
    %269 = arith.mulf %7, %268 : vector<7x7xf32>
    %c43 = arith.constant 43 : index
    %270 = memref.load %arg1[%c43] : memref<72xf32, #tpu.memory_space<smem>>
    %271 = vector.broadcast %270 : f32 to vector<7x7xf32>
    %272 = arith.mulf %9, %271 : vector<7x7xf32>
    %c52 = arith.constant 52 : index
    %273 = memref.load %arg1[%c52] : memref<72xf32, #tpu.memory_space<smem>>
    %274 = vector.broadcast %273 : f32 to vector<7x7xf32>
    %275 = arith.mulf %11, %274 : vector<7x7xf32>
    %c61 = arith.constant 61 : index
    %276 = memref.load %arg1[%c61] : memref<72xf32, #tpu.memory_space<smem>>
    %277 = vector.broadcast %276 : f32 to vector<7x7xf32>
    %278 = arith.mulf %13, %277 : vector<7x7xf32>
    %c70 = arith.constant 70 : index
    %279 = memref.load %arg1[%c70] : memref<72xf32, #tpu.memory_space<smem>>
    %280 = vector.broadcast %279 : f32 to vector<7x7xf32>
    %281 = arith.mulf %15, %280 : vector<7x7xf32>
    %282 = arith.addf %260, %263 : vector<7x7xf32>
    %283 = arith.addf %266, %269 : vector<7x7xf32>
    %284 = arith.addf %272, %275 : vector<7x7xf32>
    %285 = arith.addf %278, %281 : vector<7x7xf32>
    %286 = arith.addf %282, %283 : vector<7x7xf32>
    %287 = arith.addf %284, %285 : vector<7x7xf32>
    %288 = arith.addf %286, %287 : vector<7x7xf32>
    %cst_43 = arith.constant 0.000000e+00 : f32
    %289 = vector.broadcast %cst_43 : f32 to vector<7x2xf32>
    %cst_44 = arith.constant 0.000000e+00 : f32
    %290 = vector.broadcast %cst_44 : f32 to vector<7x2xf32>
    %291 = tpu.concatenate %289, %288, %290 in 1 : vector<7x2xf32>, vector<7x7xf32>, vector<7x2xf32> -> vector<7x11xf32>
    %c8 = arith.constant 8 : index
    %292 = memref.load %arg1[%c8] : memref<72xf32, #tpu.memory_space<smem>>
    %293 = vector.broadcast %292 : f32 to vector<7x7xf32>
    %294 = arith.mulf %1, %293 : vector<7x7xf32>
    %c17 = arith.constant 17 : index
    %295 = memref.load %arg1[%c17] : memref<72xf32, #tpu.memory_space<smem>>
    %296 = vector.broadcast %295 : f32 to vector<7x7xf32>
    %297 = arith.mulf %3, %296 : vector<7x7xf32>
    %c26 = arith.constant 26 : index
    %298 = memref.load %arg1[%c26] : memref<72xf32, #tpu.memory_space<smem>>
    %299 = vector.broadcast %298 : f32 to vector<7x7xf32>
    %300 = arith.mulf %5, %299 : vector<7x7xf32>
    %c35 = arith.constant 35 : index
    %301 = memref.load %arg1[%c35] : memref<72xf32, #tpu.memory_space<smem>>
    %302 = vector.broadcast %301 : f32 to vector<7x7xf32>
    %303 = arith.mulf %7, %302 : vector<7x7xf32>
    %c44 = arith.constant 44 : index
    %304 = memref.load %arg1[%c44] : memref<72xf32, #tpu.memory_space<smem>>
    %305 = vector.broadcast %304 : f32 to vector<7x7xf32>
    %306 = arith.mulf %9, %305 : vector<7x7xf32>
    %c53 = arith.constant 53 : index
    %307 = memref.load %arg1[%c53] : memref<72xf32, #tpu.memory_space<smem>>
    %308 = vector.broadcast %307 : f32 to vector<7x7xf32>
    %309 = arith.mulf %11, %308 : vector<7x7xf32>
    %c62 = arith.constant 62 : index
    %310 = memref.load %arg1[%c62] : memref<72xf32, #tpu.memory_space<smem>>
    %311 = vector.broadcast %310 : f32 to vector<7x7xf32>
    %312 = arith.mulf %13, %311 : vector<7x7xf32>
    %c71 = arith.constant 71 : index
    %313 = memref.load %arg1[%c71] : memref<72xf32, #tpu.memory_space<smem>>
    %314 = vector.broadcast %313 : f32 to vector<7x7xf32>
    %315 = arith.mulf %15, %314 : vector<7x7xf32>
    %316 = arith.addf %294, %297 : vector<7x7xf32>
    %317 = arith.addf %300, %303 : vector<7x7xf32>
    %318 = arith.addf %306, %309 : vector<7x7xf32>
    %319 = arith.addf %312, %315 : vector<7x7xf32>
    %320 = arith.addf %316, %317 : vector<7x7xf32>
    %321 = arith.addf %318, %319 : vector<7x7xf32>
    %322 = arith.addf %320, %321 : vector<7x7xf32>
    %cst_45 = arith.constant 0.000000e+00 : f32
    %323 = vector.broadcast %cst_45 : f32 to vector<7x4xf32>
    %324 = tpu.concatenate %323, %322 in 1 : vector<7x4xf32>, vector<7x7xf32> -> vector<7x11xf32>
    %325 = arith.addf %257, %291 : vector<7x11xf32>
    %326 = arith.addf %325, %324 : vector<7x11xf32>
    %cst_46 = arith.constant 0.000000e+00 : f32
    %327 = vector.broadcast %cst_46 : f32 to vector<4x11xf32>
    %328 = tpu.concatenate %327, %326 in 0 : vector<4x11xf32>, vector<7x11xf32> -> vector<11x11xf32>
    %329 = arith.addf %119, %224 : vector<11x11xf32>
    %330 = arith.addf %329, %328 : vector<11x11xf32>
    %c0_47 = arith.constant 0 : index
    %331 = memref.load %arg2[%c0_47] : memref<1xf32, #tpu.memory_space<smem>>
    %332 = vector.broadcast %331 : f32 to vector<11x11xf32>
    %333 = arith.addf %330, %332 : vector<11x11xf32>
    %cst_48 = arith.constant -2.000000e+00 : f32
    %334 = vector.broadcast %cst_48 : f32 to vector<11x11xf32>
    %335 = arith.maximumf %333, %334 : vector<11x11xf32>
    %cst_49 = arith.constant 0.000000e+00 : f32
    %336 = vector.broadcast %cst_49 : f32 to vector<11x11xf32>
    %337 = arith.minimumf %335, %336 : vector<11x11xf32>
    %c0_50 = arith.constant 0 : index
    %c0_51 = arith.constant 0 : index
    %c0_52 = arith.constant 0 : index
    %c0_53 = arith.constant 0 : index
    %338 = vector.load %arg3[%c0_50, %c0_51, %c0_52, %c0_53] : memref<1x1x11x11xf32, #tpu.memory_space<vmem>>, vector<1x1x11x11xf32>
    %339 = vector.shape_cast %338 : vector<1x1x11x11xf32> to vector<11x11xf32>
    %340 = vector.shape_cast %337 : vector<11x11xf32> to vector<1x1x11x11xf32>
    tpu.vector_store %arg3[%c0_50, %c0_51, %c0_52, %c0_53], %340 {strides = array<i32>} : memref<1x1x11x11xf32, #tpu.memory_space<vmem>>, vector<1x1x11x11xf32>,
    return
  }
}

</mosaic_0001>

<bundles_post_ra>
// kernel: conv_transpose_clamp.1
= control target key start
LH: loop header
LB: loop body
LE: loop exit
PB: predicated region body
PF: predicated region fallthrough
CT: control target
= control target key end

     0   :  { %9 = vsyncpa [#allocation4], 0  ;;  %s498_s15 = smov [#allocation3]   ;;  %s714_s0 = inlined_call_operand.vmem [shape: f32[1,8,7,7], index: 0, kind: input, shape index: {}]   ;;  %s715_s1 = inlined_call_operand.vmem [shape: f32[72], index: 1, kind: input, shape index: {}]   ;;  %s716_s2 = inlined_call_operand.<no memory space> [shape: f32[1], index: 2, kind: input, shape index: {}]   ;;  %s717_s3 = inlined_call_operand.vmem [shape: f32[1,1,11,11], index: 3, kind: output, shape index: {}]  }
   0x1   :  { %s17_s14 = sshll.u32 %s715_s1, 4  ;;  %s18_s14 = int_to_ptr.vmem [resolvable:$true] %s17_s14 }
   0x2   :  { %20 = dma.vmem_to_smem %s18_s14, 16, %s498_s15, [#allocation4]  }
   0x3   :  { %496 = dma.done.wait [#allocation4], 16  }
   0x4   :  { %497 = vsyncadd [#allocation4], 4294967280 }
   0x5   :  { %27 = sfence }
   0x6   :  { %s465_s16 = sld [smem:[#allocation3 + $0x7]]  ;;  %v527_v0 = vld [vmem:[%s714_s0] sm:$0x7f]  ;;  %v532_v1 = vld [vmem:[%s714_s0 + $0x8] sm:$0x7f]  ;;  %s500_s14 = smov 4  }
   0x7   :  { %s466_s17 = sld [smem:[#allocation3 + $0x10]]  ;;  %v537_v2 = vld [vmem:[%s714_s0 + $0x10] sm:$0x7f]  ;;  %v542_v4 = vld [vmem:[%s714_s0 + $0x18] sm:$0x7f]  ;;  %vm111_vm0 = vcmask 15360  }
   0x8   :  { %s467_s18 = sld [smem:[#allocation3 + $0x19]]  ;;  %v547_v6 = vld [vmem:[%s714_s0 + $0x20] sm:$0x7f]  ;;  %v554_v10 = vld [vmem:[%s714_s0 + $0x28] sm:$0x7f]  ;;  %vm74_vm1 = vcmask 56320  }
   0x9   :  { %s468_s19 = sld [smem:[#allocation3 + $0x22]]  ;;  %v560_v13 = vld [vmem:[%s714_s0 + $0x30] sm:$0x7f]  ;;  %v566_v16 = vld [vmem:[%s714_s0 + $0x38] sm:$0x7f]  ;;  %vm113_vm2 = vcmask 72704  }
   0xa   :  { %s469_s20 = sld [smem:[#allocation3 + $0x2b]]  ;;  %vm150_vm3 = vcmask 31744   ;;  %vm268_vm4 = vcmask 1040384   ;;  %vm266_vm5 = vcmask 1041408   ;;  %vm396_vm6 = vcmask 83968  }
   0xb   :  { %s470_s1 = sld [smem:[#allocation3 + $0x34]]  ;;  %vm154_vm7 = vcmask 1046528   ;;  %vm380_vm8 = vcmask 1043456   ;;  %vm394_vm9 = vcmask 89088  }
   0xc   :  { %v303_v3 = vstv %s465_s16  ;;  %s471_s27 = sld [smem:[#allocation3 + $0x3d]] }
   0xd   :  { %v306_v5 = vstv %s466_s17  ;;  %s472_s30 = sld [smem:[#allocation3 + $0x46]]  ;;  %v304_v7 = vmul.f32 %v303_v3, %v527_v0 }
   0xe   :  { %v307_v8 = vmul.f32 %v532_v1, %v306_v5  ;;  %v309_v9 = vstv %s467_s18  ;;  %s441_s6 = sld [smem:[#allocation3 + $0x4]] }
   0xf   :  { %v310_v11 = vmul.f32 %v537_v2, %v309_v9  ;;  %v312_v12 = vstv %s468_s19  ;;  %s442_s9 = sld [smem:[#allocation3 + $0xd]] }
  0x10   :  { %v313_v14 = vmul.f32 %v542_v4, %v312_v12  ;;  %v315_v15 = vstv %s469_s20  ;;  %s443_s12 = sld [smem:[#allocation3 + $0x16]]  ;;  %v326_v21 = vadd.f32 %v307_v8, %v304_v7 }
  0x11   :  { %v316_v17 = vmul.f32 %v547_v6, %v315_v15  ;;  %v318_v18 = vstv %s470_s1  ;;  %s444_s15 = sld [smem:[#allocation3 + $0x1f]]  ;;  %s499_s1 = smov 2  }
  0x12   :  { %v319_v19 = vmul.f32 %v554_v10, %v318_v18  ;;  %v321_v20 = vstv %s471_s27  ;;  %v327_v22 = vadd.f32 %v313_v14, %v310_v11  ;;  %s445_s16 = sld [smem:[#allocation3 + $0x28]] }
  0x13   :  { %v322_v23 = vmul.f32 %v560_v13, %v321_v20  ;;  %v324_v24 = vstv %s472_s30  ;;  %s446_s17 = sld [smem:[#allocation3 + $0x31]] }
  0x14   :  { %v325_v25 = vmul.f32 %v566_v16, %v324_v24  ;;  %v328_v26 = vadd.f32 %v319_v19, %v316_v17  ;;  %v189_v27 = vstv %s441_s6  ;;  %s447_s0 = sld [smem:[#allocation3 + $0x3a]]  ;;  %v330_v31 = vadd.f32 %v327_v22, %v326_v21 }
  0x15   :  { %v190_v28 = vmul.f32 %v189_v27, %v527_v0  ;;  %v192_v29 = vstv %s442_s9  ;;  %s448_s18 = sld [smem:[#allocation3 + $0x43]] }
  0x16   :  { %v329_v30 = vadd.f32 %v325_v25, %v322_v23  ;;  %v193_v32 = vmul.f32 %v532_v1, %v192_v29  ;;  %v195_v33 = vstv %s443_s12  ;;  %s449_s19 = sld [smem:[#allocation3 + $0x5]] }
  0x17   :  { %v196_v34 = vmul.f32 %v537_v2, %v195_v33  ;;  %v198_v35 = vstv %s444_s15  ;;  %s450_s20 = sld [smem:[#allocation3 + $0xe]] }
  0x18   :  { %v331_v36 = vadd.f32 %v329_v30, %v328_v26  ;;  %v199_v37 = vmul.f32 %v542_v4, %v198_v35  ;;  %v201_v38 = vstv %s445_s16  ;;  %s451_s21 = sld [smem:[#allocation3 + $0x17]]  ;;  %v212_v41 = vadd.f32 %v193_v32, %v190_v28 }
  0x19   :  { %v202_v39 = vmul.f32 %v547_v6, %v201_v38  ;;  %v204_v40 = vstv %s446_s17  ;;  %s452_s22 = sld [smem:[#allocation3 + $0x20]] }
  0x1a   :  { %v332_v42 = vadd.f32 %v331_v36, %v330_v31  ;;  %v205_v43 = vmul.f32 %v554_v10, %v204_v40  ;;  %v207_v44 = vstv %s447_s0  ;;  %v213_v45 = vadd.f32 %v199_v37, %v196_v34  ;;  %s453_s23 = sld [smem:[#allocation3 + $0x29]] }
  0x1b   :  { %v208_v46 = vmul.f32 %v560_v13, %v207_v44  ;;  %v210_v47 = vstv %s448_s18  ;;  %s454_s24 = sld [smem:[#allocation3 + $0x32]] }
  0x1c   :  { %334 = vrot.lane.b32.xlu1 %v332_v42, %s499_s1  ;;  %v211_v48 = vmul.f32 %v566_v16, %v210_v47  ;;  %v214_v49 = vadd.f32 %v205_v43, %v202_v39  ;;  %v226_v50 = vstv %s449_s19  ;;  %s455_s25 = sld [smem:[#allocation3 + $0x3b]]  ;;  %v216_v54 = vadd.f32 %v213_v45, %v212_v41 }
  0x1d   :  { %v227_v51 = vmul.f32 %v226_v50, %v527_v0  ;;  %v229_v52 = vstv %s450_s20  ;;  %s456_s26 = sld [smem:[#allocation3 + $0x44]] }
  0x1e   :  { %v215_v53 = vadd.f32 %v211_v48, %v208_v46  ;;  %v230_v55 = vmul.f32 %v532_v1, %v229_v52  ;;  %v232_v56 = vstv %s451_s21  ;;  %s417_s27 = sld [smem:[#allocation3 + $0x1]] }
  0x1f   :  { %v233_v57 = vmul.f32 %v537_v2, %v232_v56  ;;  %v235_v58 = vstv %s452_s22  ;;  %s418_s28 = sld [smem:[#allocation3 + $0xa]] }
  0x20   :  { %v217_v59 = vadd.f32 %v215_v53, %v214_v49  ;;  %v236_v60 = vmul.f32 %v542_v4, %v235_v58  ;;  %v238_v61 = vstv %s453_s23  ;;  %s419_s29 = sld [smem:[#allocation3 + $0x13]]  ;;  %v249_v3 = vadd.f32 %v230_v55, %v227_v51 }
  0x21   :  { %v239_v62 = vmul.f32 %v547_v6, %v238_v61  ;;  %v241_v63 = vstv %s454_s24  ;;  %s420_s30 = sld [smem:[#allocation3 + $0x1c]] }
  0x22   :  { %v218_v5 = vadd.f32 %v217_v59, %v216_v54  ;;  %v242_v7 = vmul.f32 %v554_v10, %v241_v63  ;;  %v244_v8 = vstv %s455_s25  ;;  %v250_v9 = vadd.f32 %v236_v60, %v233_v57  ;;  %s421_s4 = sld [smem:[#allocation3 + $0x25]] }
  0x23   :  { %v245_v11 = vmul.f32 %v560_v13, %v244_v8  ;;  %v247_v12 = vstv %s456_s26  ;;  %s422_s5 = sld [smem:[#allocation3 + $0x2e]] }
  0x24   :  { %220 = vrot.lane.b32.xlu0 %v218_v5, %s499_s1  ;;  %v248_v14 = vmul.f32 %v566_v16, %v247_v12  ;;  %v251_v15 = vadd.f32 %v242_v7, %v239_v62  ;;  %v77_v17 = vstv %s417_s27  ;;  %s423_s6 = sld [smem:[#allocation3 + $0x37]]  ;;  %v253_v21 = vadd.f32 %v250_v9, %v249_v3 }
  0x25   :  { %v78_v18 = vmul.f32 %v77_v17, %v527_v0  ;;  %v80_v19 = vstv %s418_s28  ;;  %s424_s7 = sld [smem:[#allocation3 + $0x40]] }
  0x26   :  { %v252_v20 = vadd.f32 %v248_v14, %v245_v11  ;;  %v81_v22 = vmul.f32 %v532_v1, %v80_v19  ;;  %v83_v23 = vstv %s419_s29  ;;  %s425_s8 = sld [smem:[#allocation3 + $0x2]] }
  0x27   :  { %v84_v24 = vmul.f32 %v537_v2, %v83_v23  ;;  %v86_v25 = vstv %s420_s30  ;;  %s426_s9 = sld [smem:[#allocation3 + $0xb]] }
  0x28   :  { %v254_v26 = vadd.f32 %v252_v20, %v251_v15  ;;  %v87_v27 = vmul.f32 %v542_v4, %v86_v25  ;;  %v89_v28 = vstv %s421_s4  ;;  %s427_s10 = sld [smem:[#allocation3 + $0x14]]  ;;  %v100_v31 = vadd.f32 %v81_v22, %v78_v18 }
  0x29   :  { %v90_v29 = vmul.f32 %v547_v6, %v89_v28  ;;  %v92_v30 = vstv %s422_s5  ;;  %s428_s11 = sld [smem:[#allocation3 + $0x1d]] }
  0x2a   :  { %v255_v32 = vadd.f32 %v254_v26, %v253_v21  ;;  %v93_v33 = vmul.f32 %v554_v10, %v92_v30  ;;  %v95_v34 = vstv %s423_s6  ;;  %v101_v35 = vadd.f32 %v87_v27, %v84_v24  ;;  %s429_s12 = sld [smem:[#allocation3 + $0x26]] }
  0x2b   :  { %v96_v36 = vmul.f32 %v560_v13, %v95_v34  ;;  %v98_v37 = vstv %s424_s7  ;;  %s430_s13 = sld [smem:[#allocation3 + $0x2f]] }
  0x2c   :  { %257 = vrot.lane.b32.xlu1 %v255_v32, %s500_s14  ;;  %v99_v38 = vmul.f32 %v566_v16, %v98_v37  ;;  %v102_v39 = vadd.f32 %v93_v33, %v90_v29  ;;  %v116_v40 = vstv %s425_s8  ;;  %s431_s15 = sld [smem:[#allocation3 + $0x38]]  ;;  %v104_v44 = vadd.f32 %v101_v35, %v100_v31 }
  0x2d   :  { %v117_v41 = vmul.f32 %v116_v40, %v527_v0  ;;  %v119_v42 = vstv %s426_s9  ;;  %s432_s16 = sld [smem:[#allocation3 + $0x41]] }
  0x2e   :  { %v103_v43 = vadd.f32 %v99_v38, %v96_v36  ;;  %v120_v45 = vmul.f32 %v532_v1, %v119_v42  ;;  %v122_v46 = vstv %s427_s10  ;;  %s473_s17 = sld [smem:[#allocation3 + $0x8]] }
  0x2f   :  { %v123_v47 = vmul.f32 %v537_v2, %v122_v46  ;;  %v125_v48 = vstv %s428_s11  ;;  %s474_s0 = sld [smem:[#allocation3 + $0x11]] }
  0x30   :  { %v105_v49 = vadd.f32 %v103_v43, %v102_v39  ;;  %v126_v50 = vmul.f32 %v542_v4, %v125_v48  ;;  %v128_v51 = vstv %s429_s12  ;;  %s475_s18 = sld [smem:[#allocation3 + $0x1a]]  ;;  %v139_v54 = vadd.f32 %v120_v45, %v117_v41 }
  0x31   :  { %v129_v52 = vmul.f32 %v547_v6, %v128_v51  ;;  %v131_v53 = vstv %s430_s13  ;;  %s476_s19 = sld [smem:[#allocation3 + $0x23]] }
  0x32   :  { %v106_v55 = vadd.f32 %v105_v49, %v104_v44  ;;  %v132_v56 = vmul.f32 %v554_v10, %v131_v53  ;;  %v134_v57 = vstv %s431_s15  ;;  %v140_v58 = vadd.f32 %v126_v50, %v123_v47  ;;  %s477_s20 = sld [smem:[#allocation3 + $0x2c]] }
  0x33   :  { %v135_v59 = vmul.f32 %v560_v13, %v134_v57  ;;  %v137_v60 = vstv %s432_s16  ;;  %s478_s21 = sld [smem:[#allocation3 + $0x35]] }
  0x34   :  { %108 = vrot.lane.b32.xlu0 %v106_v55, %s499_s1  ;;  %v138_v61 = vmul.f32 %v566_v16, %v137_v60  ;;  %v141_v62 = vadd.f32 %v132_v56, %v129_v52  ;;  %v340_v63 = vstv %s473_s17  ;;  %s479_s22 = sld [smem:[#allocation3 + $0x3e]]  ;;  %v143_v8 = vadd.f32 %v140_v58, %v139_v54 }
  0x35   :  { %v341_v3 = vmul.f32 %v340_v63, %v527_v0  ;;  %v343_v5 = vstv %s474_s0  ;;  %s480_s23 = sld [smem:[#allocation3 + $0x47]] }
  0x36   :  { %v142_v7 = vadd.f32 %v138_v61, %v135_v59  ;;  %v344_v9 = vmul.f32 %v532_v1, %v343_v5  ;;  %v346_v11 = vstv %s475_s18  ;;  %s618_s24 = sld [smem:[#allocation3 + $0x6]] }
  0x37   :  { %v347_v12 = vmul.f32 %v537_v2, %v346_v11  ;;  %v349_v14 = vstv %s476_s19  ;;  %s458_s1 = sld [smem:[#allocation3 + $0xf]] }
  0x38   :  { %v144_v15 = vadd.f32 %v142_v7, %v141_v62  ;;  %v350_v17 = vmul.f32 %v542_v4, %v349_v14  ;;  %v352_v18 = vstv %s477_s20  ;;  %v363_v21 = vadd.f32 %v344_v9, %v341_v3  ;;  %s459_s25 = sld [smem:[#allocation3 + $0x18]] }
  0x39   :  { %v353_v19 = vmul.f32 %v547_v6, %v352_v18  ;;  %v355_v20 = vstv %s478_s21  ;;  %s460_s26 = sld [smem:[#allocation3 + $0x21]] }
  0x3a   :  { %v145_v22 = vadd.f32 %v144_v15, %v143_v8  ;;  %v356_v23 = vmul.f32 %v554_v10, %v355_v20  ;;  %v358_v24 = vstv %s479_s22  ;;  %v364_v25 = vadd.f32 %v350_v17, %v347_v12  ;;  %s461_s27 = sld [smem:[#allocation3 + $0x2a]] }
  0x3b   :  { %v359_v26 = vmul.f32 %v560_v13, %v358_v24  ;;  %v361_v27 = vstv %s480_s23  ;;  %s462_s28 = sld [smem:[#allocation3 + $0x33]] }
  0x3c   :  { %147 = vrot.lane.b32.xlu2 %v145_v22, %s500_s14  ;;  %v362_v28 = vmul.f32 %v566_v16, %v361_v27  ;;  %v365_v29 = vadd.f32 %v356_v23, %v353_v19  ;;  %v367_v31 = vadd.f32 %v364_v25, %v363_v21  ;;  %s463_s29 = sld [smem:[#allocation3 + $0x3c]]  ;;  %v271_v38 = vstv %s618_s24 }
  0x3d   :  { %s464_s30 = sld [smem:[#allocation3 + $0x45]]  ;;  %v274_v34 = vstv %s458_s1  ;;  %v272_v49 = vmul.f32 %v271_v38, %v527_v0 }
  0x3e   :  { %v366_v30 = vadd.f32 %v362_v28, %v359_v26  ;;  %s620_s4 = sld [smem:[#allocation3 + $0x3]]  ;;  %v277_v35 = vstv %s459_s25  ;;  %v275_v42 = vmul.f32 %v532_v1, %v274_v34 }
  0x3f   :  { %s622_s5 = sld [smem:[#allocation3 + $0xc]]  ;;  %v280_v36 = vstv %s460_s26  ;;  %v278_v43 = vmul.f32 %v537_v2, %v277_v35 }
  0x40   :  { %v368_v32 = vadd.f32 %v366_v30, %v365_v29  ;;  %s624_s6 = sld [smem:[#allocation3 + $0x15]]  ;;  %v283_v37 = vstv %s461_s27  ;;  %v281_v44 = vmul.f32 %v542_v4, %v280_v36  ;;  %v294_v11 = vadd.f32 %v275_v42, %v272_v49 }
  0x41   :  { %s626_s7 = sld [smem:[#allocation3 + $0x1e]]  ;;  %v286_v39 = vstv %s462_s28  ;;  %v284_v45 = vmul.f32 %v547_v6, %v283_v37 }
  0x42   :  { %v369_v33 = vadd.f32 %v368_v32, %v367_v31  ;;  %s628_s8 = sld [smem:[#allocation3 + $0x27]]  ;;  %v289_v40 = vstv %s463_s29  ;;  %v287_v46 = vmul.f32 %v554_v10, %v286_v39  ;;  %v295_v7 = vadd.f32 %v281_v44, %v278_v43 }
  0x43   :  { %s630_s9 = sld [smem:[#allocation3 + $0x30]]  ;;  %v292_v41 = vstv %s464_s30  ;;  %v290_v47 = vmul.f32 %v560_v13, %v289_v40 }
  0x44   :  { %371 = vrot.lane.b32.xlu2 %v369_v33, %s500_s14  ;;  %s632_s10 = sld [smem:[#allocation3 + $0x39]]  ;;  %v293_v48 = vmul.f32 %v566_v16, %v292_v41  ;;  %v157_v54 = vstv %s620_s4  ;;  %v296_v8 = vadd.f32 %v287_v46, %v284_v45  ;;  %v298_v19 = vadd.f32 %v295_v7, %v294_v11 }
  0x45   :  { %s634_s11 = sld [smem:[#allocation3 + $0x42]]  ;;  %v160_v50 = vstv %s622_s5  ;;  %v158_v5 = vmul.f32 %v157_v54, %v527_v0 }
  0x46   :  { %s637_s12 = sld [smem:[#allocation3]]  ;;  %v163_v51 = vstv %s624_s6  ;;  %v161_v58 = vmul.f32 %v532_v1, %v160_v50  ;;  %v297_v9 = vadd.f32 %v293_v48, %v290_v47 }
  0x47   :  { %s643_s13 = sld [smem:[#allocation3 + $0x9]]  ;;  %v166_v52 = vstv %s626_s7  ;;  %v164_v59 = vmul.f32 %v537_v2, %v163_v51 }
  0x48   :  { %s649_s14 = sld [smem:[#allocation3 + $0x12]]  ;;  %v169_v53 = vstv %s628_s8  ;;  %v167_v60 = vmul.f32 %v542_v4, %v166_v52  ;;  %v180_v17 = vadd.f32 %v161_v58, %v158_v5  ;;  %v299_v18 = vadd.f32 %v297_v9, %v296_v8 }
  0x49   :  { %s655_s15 = sld [smem:[#allocation3 + $0x1b]]  ;;  %v172_v55 = vstv %s630_s9  ;;  %v170_v61 = vmul.f32 %v547_v6, %v169_v53  ;;  %v387_v58 = vstv %s716_s2 }
  0x4a   :  { %v175_v56 = vstv %s632_s10  ;;  %s661_s16 = sld [smem:[#allocation3 + $0x24]]  ;;  %v173_v62 = vmul.f32 %v554_v10, %v172_v55  ;;  %v181_v12 = vadd.f32 %v167_v60, %v164_v59  ;;  %v300_v31 = vadd.f32 %v299_v18, %v298_v19 }
  0x4b   :  { %v178_v57 = vstv %s634_s11  ;;  %s663_s17 = sld [smem:[#allocation3 + $0x2d]]  ;;  %v176_v63 = vmul.f32 %v560_v13, %v175_v56 }
  0x4c   :  { %s669_s0 = sld [smem:[#allocation3 + $0x36]]  ;;  %v179_v3 = vmul.f32 %v566_v16, %v178_v57  ;;  %v182_v14 = vadd.f32 %v173_v62, %v170_v61  ;;  %v44_v20 = vstv %s637_s12  ;;  %v184_v28 = vadd.f32 %v181_v12, %v180_v17 }
  0x4d   :  { %s675_s18 = sld [smem:[#allocation3 + $0x3f]]  ;;  %v47_v21 = vstv %s643_s13  ;;  %v45_v42 = vmul.f32 %v44_v20, %v527_v0 }
  0x4e   :  { %v183_v15 = vadd.f32 %v179_v3, %v176_v63  ;;  %v50_v22 = vstv %s649_s14  ;;  %v48_v32 = vmul.f32 %v532_v1, %v47_v21 }
  0x4f   :  { %v53_v23 = vstv %s655_s15  ;;  %v51_v33 = vmul.f32 %v537_v2, %v50_v22  ;;  %v301_v2 = vsel %vm74_vm1, %v300_v31, 0.0 }
  0x50   :  { %v56_v24 = vstv %s661_s16  ;;  %v185_v27 = vadd.f32 %v183_v15, %v182_v14  ;;  %v54_v34 = vmul.f32 %v542_v4, %v53_v23  ;;  %v67_v45 = vadd.f32 %v48_v32, %v45_v42 }
  0x51   :  { %v59_v25 = vstv %s663_s17  ;;  %v57_v35 = vmul.f32 %v547_v6, %v56_v24 }
  0x52   :  { %v62_v29 = vstv %s669_s0  ;;  %v60_v36 = vmul.f32 %v554_v10, %v59_v25  ;;  %v186_v43 = vadd.f32 %v185_v27, %v184_v28  ;;  %v68_v6 = vadd.f32 %v54_v34, %v51_v33 }
  0x53   :  { %v65_v30 = vstv %s675_s18  ;;  %v63_v40 = vmul.f32 %v560_v13, %v62_v29 }
  0x54   :  { %v66_v41 = vmul.f32 %v566_v16, %v65_v30  ;;  %v69_v44 = vadd.f32 %v60_v36, %v57_v35  ;;  %v187_v46 = vsel %vm74_vm1, %v186_v43, 0.0  ;;  %v71_v50 = vadd.f32 %v68_v6, %v67_v45 }
  0x56   :  { %v70_v10 = vadd.f32 %v66_v41, %v63_v40 }
  0x58   :  { %v72_v49 = vadd.f32 %v70_v10, %v69_v44 }
  0x5a   :  { %v73_v56 = vadd.f32 %v72_v49, %v71_v50 }
  0x5c   :  { %v75_v62 = vsel %vm74_vm1, %v73_v56, 0.0 }
  0x8e   :  { %v335_v26 = vpop.permute.xlu1 %334 }
  0x8f   :  { %v337_v38 = vsel %vm111_vm0, 0.0, %v335_v26 }
  0x90   :  { %v338_v4 = vsel %vm113_vm2, %v337_v38, 0.0 }
  0x91   :  { %v375_v13 = vadd.f32 %v338_v4, %v301_v2 }
  0x96   :  { %v148_v37 = vpop.permute.xlu2 %147  ;;  %v221_v39 = vpop.permute.xlu0 %220 }
  0x97   :  { %v223_v1 = vsel %vm111_vm0, 0.0, %v221_v39  ;;  %v151_v9 = vsel %vm150_vm3, 0.0, %v148_v37 }
  0x98   :  { %v224_v47 = vsel %vm113_vm2, %v223_v1, 0.0 }
  0x99   :  { %v261_v16 = vadd.f32 %v224_v47, %v187_v46 }
  0x9e   :  { %v372_v48 = vpop.permute.xlu2 %371  ;;  %v258_v0 = vpop.permute.xlu1 %257 }
  0x9f   :  { %v374_v51 = vsel %vm150_vm3, 0.0, %v372_v48  ;;  %v260_v52 = vsel %vm150_vm3, 0.0, %v258_v0 }
  0xa0   :  { %v376_v53 = vadd.f32 %v375_v13, %v374_v51  ;;  %v262_v54 = vadd.f32 %v261_v16, %v260_v52 }
  0xa2   :  { %v264_v55 = vrot.slane %v262_v54, 6  ;;  %v378_v57 = vrot.slane %v376_v53, 4 }
  0xa4   :  { %v269_v59 = vsel %vm268_vm4, %v264_v55, 0.0  ;;  %v267_v11 = vsel %vm266_vm5, 0.0, %v264_v55  ;;  %v381_v18 = vsel %vm380_vm8, 0.0, %v378_v57 }
  0xa5   :  { %v385_v60 = vadd.f32 %v378_v57, %v269_v59 }
  0xa6   :  { %v109_v61 = vpop.permute.xlu0 %108 }
  0xa7   :  { %v389_v63 = vadd.f32 %v387_v58, %v385_v60  ;;  %v112_v3 = vsel %vm111_vm0, 0.0, %v109_v61 }
  0xa8   :  { %v114_v5 = vsel %vm113_vm2, %v112_v3, 0.0 }
  0xa9   :  { %v391_v7 = vmax.f32 %v389_v63, -2.0  ;;  %v152_v8 = vadd.f32 %v114_v5, %v75_v62 }
  0xab   :  { %v393_v12 = vmin.f32 %v391_v7, 0.0  ;;  %v153_v14 = vadd.f32 %v152_v8, %v151_v9 }
  0xad   :  { %397 = vst.msk [vmem:[%s717_s3 + $0x8] sm:$0x7] %vm396_vm6, %v393_v12  ;;  %v155_v15 = vsel %vm154_vm7, %v153_v14, 0.0 }
  0xae   :  { %v382_v17 = vadd.f32 %v267_v11, %v155_v15 }
  0xb0   :  { %v384_v19 = vadd.f32 %v382_v17, %v381_v18 }
  0xb2   :  { %v388_v20 = vadd.f32 %v387_v58, %v384_v19 }
  0xb4   :  { %v390_v21 = vmax.f32 %v388_v20, -2.0 }
  0xb6   :  { %v392_v22 = vmin.f32 %v390_v21, 0.0 }
  0xb8   :  { %395 = vst.msk [vmem:[%s717_s3] sm:$0xff] %vm394_vm9, %v392_v22 }
  0xb9   :  { %402 = vsyncpa [#allocation4], 1 }

</bundles_post_ra>
